<compile_context>
chip_gen: v6e
topology: v6e:2x2x1
jax: 0.10.0
libtpu: 0.0.40
codegen_flags: <defaults>
</compile_context>

<pallas_src>
import functools

import jax
import jax.numpy as jnp
import numpy as np
from jax.experimental import pallas as pl
from jax.experimental.pallas import tpu as pltpu

NUM_FEATURES = 512   # self.num_features in MYNET
FC0_OUT = 200        # nn.Linear(512, 200, bias=False)
FC0_PAD = 256        # padded to 256 for lane-dense stores / clean MXU N dim
NUM_CLASSES = 100    # args.num_classes (fc[1] output; unused in forward)
TEMPERATURE = 16.0   # args.temperature
EPS = 1e-12          # F.normalize default eps


# --------------------------------------------------------------------------
# Kernels
# --------------------------------------------------------------------------
def _normalize_weight_kernel(w_ref, wnt_ref, *, temperature):
    """One-shot: L2-normalize rows of (zero-padded) fc[0].weight, fold the
    temperature in, and emit the result pre-transposed as (C, FC0_PAD) bf16.

    Runs once per call (hoisted out of the per-batch-tile path).  Zero-padded
    rows stay exactly zero (0 * rsqrt(eps^2) == 0)."""
    w = w_ref[...].astype(jnp.float32)                       # (FC0_PAD, C)
    sumsq = jnp.sum(w * w, axis=-1, keepdims=True)
    inv = jax.lax.rsqrt(jnp.maximum(sumsq, EPS * EPS))       # == 1/max(||w||, eps)
    wn = (temperature * inv) * w                             # temperature folded
    wnt_ref[...] = wn.T.astype(wnt_ref.dtype)                # (C, FC0_PAD) bf16


def _pool_kernel(x_ref, pooled_ref, *, inv_hw):
    """adaptive_avg_pool2d((1,1)).squeeze(): mean over the spatial axis.

    x block is channel-minor (TN, HW, C); sum over axis=-2, f32 accumulation."""
    x = x_ref[...].astype(jnp.float32)                       # (TN, HW, C)
    pooled_ref[...] = (jnp.sum(x, axis=1) * inv_hw).astype(pooled_ref.dtype)


def _cosine_head_kernel(x_ref, wnt_ref, logits_ref, *, inv_hw):
    """Pool + L2-normalize features + cosine-similarity matmul.

    Temperature is already folded into the pre-transposed weight."""
    x = x_ref[...].astype(jnp.float32)                       # (TN, HW, C)
    pooled = jnp.sum(x, axis=1) * inv_hw                     # (TN, C)

    # F.normalize(x, p=2, dim=-1) == x * rsqrt(max(||x||^2, eps^2))
    sumsq = jnp.sum(pooled * pooled, axis=-1, keepdims=True)
    inv = jax.lax.rsqrt(jnp.maximum(sumsq, EPS * EPS))
    xn = (pooled * inv).astype(jnp.bfloat16)                 # bf16 MXU operand

    # (TN, C) @ (C, FC0_PAD): contraction on C, no per-step weight relayout.
    logits = jax.lax.dot_general(
        xn, wnt_ref[...],
        dimension_numbers=(((1,), (0,)), ((), ())),
        preferred_element_type=jnp.float32,
    )                                                        # (TN, FC0_PAD)
    logits_ref[...] = logits.astype(logits_ref.dtype)


# --------------------------------------------------------------------------
# Wrapper
# --------------------------------------------------------------------------
def _round_up(x, m):
    return (x + m - 1) // m * m


def _choose_batch_tile(n, batch_tile):
    """Pick tn: 8-aligned, <= batch_tile, minimal tail padding, and >=2 tiles
    whenever possible so v7x's two TensorCores both get work."""
    num_tiles = pl.cdiv(n, batch_tile)
    if n > 8:
        num_tiles = max(num_tiles, 2)
    tn = _round_up(pl.cdiv(n, num_tiles), 8)
    return min(tn, _round_up(n, 8))


def mynet_encode(feature_maps_nchw, fc0_weight, *, is_trans=True,
                 temperature=TEMPERATURE, batch_tile=128,
                 feature_dtype=jnp.bfloat16):
    """feature_maps_nchw: (N, C, H, W) encoder output (PyTorch layout).
    Returns pooled features (N, C) if not is_trans, else the temperature-
    scaled cosine logits (N, FC0_OUT) — exactly what MYNET.encode() returns."""
    n, c, h, w = feature_maps_nchw.shape
    assert c == NUM_FEATURES
    hw = h * w
    inv_hw = 1.0 / float(hw)

    # One-time layout change to channel-minor (N, HW, C) + bf16 cast:
    # C=512 on the 128-lane axis -> lane-dense blocks, contiguous DMA rows,
    # and half the streamed HBM bytes.  (A JAX-side encoder would emit NHWC
    # directly and skip the transpose.)
    x = feature_maps_nchw.astype(feature_dtype).transpose(0, 2, 3, 1)
    x = x.reshape(n, hw, c)

    # Batch tiling (8-aligned, capped at batch_tile=128; >=2 tiles when n>8).
    tn = _choose_batch_tile(n, batch_tile)
    n_pad = _round_up(n, tn)
    if n_pad != n:
        x = jnp.pad(x, ((0, n_pad - n), (0, 0), (0, 0)))
    grid = (n_pad // tn,)

    elem_bytes = jnp.dtype(feature_dtype).itemsize

    compiler_params = pltpu.CompilerParams(
        dimension_semantics=("parallel",),        # batch tiles are independent
        vmem_limit_bytes=32 * 1024 * 1024,        # >= 2x ~8 MiB input buffers
    )

    if not is_trans:
        pooled = pl.pallas_call(
            functools.partial(_pool_kernel, inv_hw=inv_hw),
            out_shape=jax.ShapeDtypeStruct((n_pad, c), jnp.float32),
            grid_spec=pl.GridSpec(
                grid=grid,
                in_specs=[pl.BlockSpec((tn, hw, c), lambda i: (i, 0, 0))],
                out_specs=pl.BlockSpec((tn, c), lambda i: (i, 0)),
            ),
            compiler_params=compiler_params,
            cost_estimate=pl.CostEstimate(
                flops=n_pad * hw * c,
                transcendentals=0,
                bytes_accessed=(n_pad * hw * c * elem_bytes   # features in
                                + n_pad * c * 4),             # pooled out
            ),
        )(x)
        return pooled[:n]

    # --- is_trans=True path -------------------------------------------------
    # Pad fc[0].weight 200 -> 256 rows (zeros); normalize, fold temperature,
    # and transpose ONCE.
    w_pad = jnp.pad(fc0_weight.astype(jnp.float32),
                    ((0, FC0_PAD - fc0_weight.shape[0]), (0, 0)))
    wnt = pl.pallas_call(
        functools.partial(_normalize_weight_kernel,
                          temperature=float(temperature)),
        out_shape=jax.ShapeDtypeStruct((c, FC0_PAD), jnp.bfloat16),
        grid_spec=pl.GridSpec(
            grid=(1,),
            in_specs=[pl.BlockSpec((FC0_PAD, c), lambda i: (0, 0))],
            out_specs=pl.BlockSpec((c, FC0_PAD), lambda i: (0, 0)),
        ),
    )(w_pad)

    logits = pl.pallas_call(
        functools.partial(_cosine_head_kernel, inv_hw=inv_hw),
        out_shape=jax.ShapeDtypeStruct((n_pad, FC0_PAD), jnp.float32),
        grid_spec=pl.GridSpec(
            grid=grid,
            in_specs=[
                pl.BlockSpec((tn, hw, c), lambda i: (i, 0, 0)),
                pl.BlockSpec((c, FC0_PAD), lambda i: (0, 0)),   # shared weight
            ],
            out_specs=pl.BlockSpec((tn, FC0_PAD), lambda i: (i, 0)),
        ),
        compiler_params=compiler_params,
        cost_estimate=pl.CostEstimate(
            flops=n_pad * hw * c + 2 * n_pad * c * FC0_PAD,
            transcendentals=n_pad,
            bytes_accessed=(n_pad * hw * c * elem_bytes    # feature maps
                            + c * FC0_PAD * 2              # normalized weight
                            + n_pad * FC0_PAD * 4),        # logits out
        ),
    )(x, wnt)

    return logits[:n, :FC0_OUT]


# --------------------------------------------------------------------------
# Reference (pure JAX, f32) + test
# --------------------------------------------------------------------------
def _reference_encode(feature_maps_nchw, fc0_weight, is_trans, temperature):
    pooled = jnp.mean(feature_maps_nchw.astype(jnp.float32), axis=(2, 3))
    if not is_trans:
        return pooled
    xn = pooled / jnp.maximum(
        jnp.linalg.norm(pooled, axis=-1, keepdims=True), EPS)
    wn = fc0_weight / jnp.maximum(
        jnp.linalg.norm(fc0_weight, axis=-1, keepdims=True), EPS)
    return temperature * (xn @ wn.T)


if __name__ == "__main__":
    key = jax.random.PRNGKey(0)
    k_x, k_fc0, k_fc1, k_conv = jax.random.split(key, 4)

    # Small shapes consistent with the module: batch=2, encoder output
    # feature maps of 512 channels over a 4x4 spatial grid (NCHW).
    N, C, H, W = 2, NUM_FEATURES, 4, 4
    feature_maps = jax.random.normal(k_x, (N, C, H, W), dtype=jnp.float32)

    # Deterministic parameter init (shapes from MYNET.__init__).
    fc0_w = 0.02 * jax.random.normal(k_fc0, (FC0_OUT, NUM_FEATURES),
                                     dtype=jnp.float32)
    fc1_w = 0.02 * jax.random.normal(k_fc1, (NUM_CLASSES, FC0_OUT),
                                     dtype=jnp.float32)           # unused in forward
    conv_w = 0.02 * jax.random.normal(k_conv, (512, 512, 1, 1),
                                      dtype=jnp.float32)          # unused in forward

    # is_trans=False path (default MYNET.encode behaviour): pooled features.
    pooled = mynet_encode(feature_maps, fc0_w, is_trans=False)
    # is_trans=True path: temperature-scaled cosine logits.
    logits = mynet_encode(feature_maps, fc0_w, is_trans=True,
                          temperature=TEMPERATURE)
    jax.block_until_ready((pooled, logits))

    ref_pooled = _reference_encode(feature_maps, fc0_w, False, TEMPERATURE)
    ref_logits = _reference_encode(feature_maps, fc0_w, True, TEMPERATURE)
    # Feature maps are streamed in bf16 (f32 accumulation) -> relaxed tolerance.
    np.testing.assert_allclose(np.asarray(pooled), np.asarray(ref_pooled),
                               rtol=2e-2, atol=2e-2)
    np.testing.assert_allclose(np.asarray(logits), np.asarray(ref_logits),
                               rtol=2e-2, atol=5e-2)

    print("KERNEL_OK")
</pallas_src>

<mosaic_0001>
module attributes {stable_mosaic.version = 11 : i64} {
  func.func @_pool_kernel(%arg0: i32, %arg1: memref<8x16x512xbf16, #tpu.memory_space<vmem>>, %arg2: memref<8x512xf32, #tpu.memory_space<vmem>>) attributes {dimension_semantics = [#tpu.dimension_semantics<parallel>], iteration_bounds = array<i64: 1>, scalar_prefetch = 0 : i64, scratch_operands = 0 : i64, tpu.core_type = #tpu.core_type<tc>, window_params = [{transform_indices = @transform_0, window_bounds = array<i64: 8, 16, 512>}, {transform_indices = @transform_1, window_bounds = array<i64: 8, 512>}]} {
    %c0 = arith.constant 0 : index
    %c0_0 = arith.constant 0 : index
    %c0_1 = arith.constant 0 : index
    %0 = vector.load %arg1[%c0, %c0_0, %c0_1] : memref<8x16x512xbf16, #tpu.memory_space<vmem>>, vector<8x16x512xbf16>
    %1 = arith.extf %0 : vector<8x16x512xbf16> to vector<8x16x512xf32>
    %cst = arith.constant dense<0.000000e+00> : vector<8x512xf32>
    %2 = vector.multi_reduction <add>, %1, %cst [1] : vector<8x16x512xf32> to vector<8x512xf32>
    %cst_2 = arith.constant 6.250000e-02 : f32
    %3 = vector.broadcast %cst_2 : f32 to vector<8x512xf32>
    %4 = arith.mulf %2, %3 : vector<8x512xf32>
    %c0_3 = arith.constant 0 : index
    %c0_4 = arith.constant 0 : index
    %5 = vector.load %arg2[%c0_3, %c0_4] : memref<8x512xf32, #tpu.memory_space<vmem>>, vector<8x512xf32>
    tpu.vector_store %arg2[%c0_3, %c0_4], %4 {strides = array<i32>} : memref<8x512xf32, #tpu.memory_space<vmem>>, vector<8x512xf32>,
    return
  }
  func.func @transform_0(%arg0: i32) -> (i32, i32, i32) {
    %c0_i32 = arith.constant 0 : i32
    %c0_i32_0 = arith.constant 0 : i32
    %c0_i32_1 = arith.constant 0 : i32
    return %arg0, %c0_i32, %c0_i32_0 : i32, i32, i32
  }
  func.func @transform_1(%arg0: i32) -> (i32, i32) {
    %c0_i32 = arith.constant 0 : i32
    %c0_i32_0 = arith.constant 0 : i32
    return %arg0, %c0_i32 : i32, i32
  }
}

</mosaic_0001>

<bundles_post_ra>
// kernel: tpu_custom_call.1
= control target key start
LH: loop header
LB: loop body
LE: loop exit
PB: predicated region body
PF: predicated region fallthrough
CT: control target
= control target key end

     0   :  { %6 = vsyncpa [#allocation3], 0  ;;  %s889_s0 = inlined_call_operand.hbm [shape: bf16[8,16,512], index: 0, kind: input, shape index: {}]   ;;  %s890_s1 = inlined_call_operand.hbm [shape: f32[8,512], index: 1, kind: output, shape index: {}]  }
   0x1   :  { %7 = vsyncpa [#allocation4], 0  ;;  %s513_s6 = smov [#allocation2]  }
   0x2   :  { %s13_s7 = sshll.u32 %s513_s6, 4  ;;  %s14_s7 = int_to_ptr.vmem [resolvable:$true] %s13_s7 }
   0x3   :  { %s477_s8 = scalar_lea.vmem %s14_s7, 4096  ;;  %p482_p1 = scmp.lt.s32.totalorder %s14_s7, %s14_s7 }
   0x4   :  { %p478_p0 = scmp.ne.s32.totalorder %s14_s7, %s477_s8  ;;  %p483_p2 = scmp.lt.s32.totalorder %s477_s8, %s477_s8 }
   0x6   :  { %p484_p3 = por %p483_p2, %p482_p1 }
   0x8   :  { %p485_p4 = pnand %p484_p3, %p478_p0 }
   0xa   :  { %488 = shalt.err (!%p485_p4)
}
   0xb   :  { %s514_s9 = smov 256   ;;  %s515_s10 = smov 16  }
   0xc   :  { %19 = dma.hbm_to_vmem [thread:$0]  %s889_s0, 4096, %s14_s7, [#allocation3], %s514_s9, %s514_s9, %s515_s10  }
   0xd   :  { %509 = dma.done.wait [#allocation3], 4096  }
   0xe   :  { %510 = vsyncadd [#allocation3], 4294963200  ;;  %v530_v0 = vld [vmem:[#allocation2] sm:$0xff]  ;;  %v532_v1 = vld [vmem:[#allocation2 + $0x8] sm:$0xff]  ;;  %vm407_vm0 = vcmask 1041409   ;;  %vm409_vm1 = vcmask 1042434  }
   0xf   :  { %v534_v2 = vld [vmem:[#allocation2 + $0x10] sm:$0xff]  ;;  %v536_v3 = vld [vmem:[#allocation2 + $0x18] sm:$0xff]  ;;  %v538_v4 = vld [vmem:[#allocation2 + $0x20] sm:$0xff]  ;;  %v55_v6 = vunpack.c.l.bf16 %v530_v0  ;;  %v56_v7 = vunpack.c.h.bf16 %v530_v0  ;;  %v57_v8 = vunpack.c.l.bf16 %v532_v1  ;;  %v58_v9 = vunpack.c.h.bf16 %v532_v1  ;;  %s516_s0 = smov [#allocation5]  }
  0x10   :  { %v540_v5 = vld [vmem:[#allocation2 + $0x28] sm:$0xff]  ;;  %v546_v10 = vld [vmem:[#allocation2 + $0x30] sm:$0xff]  ;;  %v548_v11 = vld [vmem:[#allocation2 + $0x38] sm:$0xff]  ;;  %v59_v13 = vunpack.c.l.bf16 %v534_v2  ;;  %v60_v14 = vunpack.c.h.bf16 %v534_v2  ;;  %v61_v15 = vunpack.c.l.bf16 %v536_v3  ;;  %v62_v16 = vunpack.c.h.bf16 %v536_v3  ;;  %s456_s13 = sshll.u32 %s516_s0, 4  ;;  %s457_s13 = int_to_ptr.vmem [resolvable:$true] %s456_s13 }
  0x11   :  { %v550_v12 = vld [vmem:[#allocation2 + $0x40] sm:$0xff]  ;;  %v556_v17 = vld [vmem:[#allocation2 + $0x48] sm:$0xff]  ;;  %v558_v18 = vld [vmem:[#allocation2 + $0x50] sm:$0xff]  ;;  %v63_v20 = vunpack.c.l.bf16 %v538_v4  ;;  %v64_v21 = vunpack.c.h.bf16 %v538_v4  ;;  %v65_v22 = vunpack.c.l.bf16 %v540_v5  ;;  %v66_v23 = vunpack.c.h.bf16 %v540_v5  ;;  %s489_s14 = scalar_lea.vmem %s457_s13, 512  ;;  %p494_p6 = scmp.lt.s32.totalorder %s457_s13, %s457_s13 }
  0x12   :  { %v560_v19 = vld [vmem:[#allocation2 + $0x58] sm:$0xff]  ;;  %v566_v24 = vld [vmem:[#allocation2 + $0x60] sm:$0xff]  ;;  %v568_v25 = vld [vmem:[#allocation2 + $0x68] sm:$0xff]  ;;  %v67_v26 = vunpack.c.l.bf16 %v546_v10  ;;  %v68_v27 = vunpack.c.h.bf16 %v546_v10  ;;  %v69_v28 = vunpack.c.l.bf16 %v548_v11  ;;  %v70_v29 = vunpack.c.h.bf16 %v548_v11  ;;  %p490_p5 = scmp.ne.s32.totalorder %s457_s13, %s489_s14  ;;  %p495_p7 = scmp.lt.s32.totalorder %s489_s14, %s489_s14 }
  0x13   :  { %v574_v30 = vld [vmem:[#allocation2 + $0x70] sm:$0xff]  ;;  %v576_v31 = vld [vmem:[#allocation2 + $0x78] sm:$0xff]  ;;  %v71_v32 = vunpack.c.l.bf16 %v550_v12  ;;  %v72_v33 = vunpack.c.h.bf16 %v550_v12  ;;  %v582_v36 = vld [vmem:[#allocation2 + $0x80] sm:$0xff]  ;;  %v75_v38 = vunpack.c.l.bf16 %v558_v18  ;;  %v76_v39 = vunpack.c.h.bf16 %v558_v18 }
  0x14   :  { %v584_v37 = vld [vmem:[#allocation2 + $0x88] sm:$0xff]  ;;  %v590_v42 = vld [vmem:[#allocation2 + $0x90] sm:$0xff]  ;;  %v592_v43 = vld [vmem:[#allocation2 + $0x98] sm:$0xff]  ;;  %v119_v45 = vadd.f32 %v59_v13, %v55_v6  ;;  %v126_v57 = vadd.f32 %v60_v14, %v56_v7  ;;  %v133_v46 = vadd.f32 %v61_v15, %v57_v8  ;;  %v140_v47 = vadd.f32 %v62_v16, %v58_v9  ;;  %p496_p8 = por %p495_p7, %p494_p6 }
  0x15   :  { %v598_v48 = vld [vmem:[#allocation2 + $0xa0] sm:$0xff]  ;;  %v600_v49 = vld [vmem:[#allocation2 + $0xa8] sm:$0xff]  ;;  %v606_v54 = vld [vmem:[#allocation2 + $0xb0] sm:$0xff]  ;;  %v147_v6 = vadd.f32 %v67_v26, %v63_v20  ;;  %v154_v0 = vadd.f32 %v68_v27, %v64_v21  ;;  %v161_v2 = vadd.f32 %v69_v28, %v65_v22  ;;  %v168_v1 = vadd.f32 %v70_v29, %v66_v23 }
  0x16   :  { %v608_v55 = vld [vmem:[#allocation2 + $0xb8] sm:$0xff]  ;;  %v614_v60 = vld [vmem:[#allocation2 + $0xc0] sm:$0xff]  ;;  %v616_v61 = vld [vmem:[#allocation2 + $0xc8] sm:$0xff]  ;;  %v120_v3 = vrot.slane %v119_v45, 4  ;;  %v127_v7 = vrot.slane %v126_v57, 4  ;;  %v134_v8 = vrot.slane %v133_v46, 4  ;;  %v897_v12 = vunpack.c.h.bf16 %v566_v24  ;;  %p497_p9 = pnand %p496_p8, %p490_p5 }
  0x17   :  { %v622_v52 = vld [vmem:[#allocation2 + $0xd0] sm:$0xff]  ;;  %v624_v56 = vld [vmem:[#allocation2 + $0xd8] sm:$0xff]  ;;  %v630_v51 = vld [vmem:[#allocation2 + $0xe0] sm:$0xff]  ;;  %v141_v9 = vrot.slane %v140_v47, 4  ;;  %v148_v13 = vrot.slane %v147_v6, 4  ;;  %v155_v14 = vrot.slane %v154_v0, 4  ;;  %v898_v18 = vunpack.c.h.bf16 %v574_v30 }
  0x18   :  { %v632_v62 = vld [vmem:[#allocation2 + $0xe8] sm:$0xff]  ;;  %v638_v50 = vld [vmem:[#allocation2 + $0xf0] sm:$0xff]  ;;  %v640_v58 = vld [vmem:[#allocation2 + $0xf8] sm:$0xff]  ;;  %v162_v4 = vrot.slane %v161_v2, 4  ;;  %v169_v15 = vrot.slane %v168_v1, 4  ;;  %v121_v10 = vadd.f32 %v120_v3, %v119_v45  ;;  %v128_v16 = vadd.f32 %v127_v7, %v126_v57 }
  0x19   :  { %v135_v20 = vadd.f32 %v134_v8, %v133_v46  ;;  %v142_v21 = vadd.f32 %v141_v9, %v140_v47  ;;  %v149_v26 = vadd.f32 %v148_v13, %v147_v6  ;;  %v156_v27 = vadd.f32 %v155_v14, %v154_v0 }
  0x1a   :  { %v163_v22 = vadd.f32 %v162_v4, %v161_v2  ;;  %v170_v28 = vadd.f32 %v169_v15, %v168_v1  ;;  %v122_v5 = vrot.slane %v121_v10, 2  ;;  %v129_v53 = vrot.slane %v128_v16, 2 }
  0x1b   :  { %v136_v11 = vrot.slane %v135_v20, 2  ;;  %v143_v23 = vrot.slane %v142_v21, 2  ;;  %v150_v29 = vrot.slane %v149_v26, 2  ;;  %v157_v44 = vrot.slane %v156_v27, 2 }
  0x1c   :  { %v164_v35 = vrot.slane %v163_v22, 2  ;;  %v171_v59 = vrot.slane %v170_v28, 2  ;;  %v123_v41 = vadd.f32 %v122_v5, %v121_v10  ;;  %v130_v63 = vadd.f32 %v129_v53, %v128_v16 }
  0x1d   :  { %v137_v40 = vadd.f32 %v136_v11, %v135_v20  ;;  %v144_v34 = vadd.f32 %v143_v23, %v142_v21  ;;  %v151_v45 = vadd.f32 %v150_v29, %v149_v26  ;;  %v158_v57 = vadd.f32 %v157_v44, %v156_v27 }
  0x1e   :  { %v165_v46 = vadd.f32 %v164_v35, %v163_v22  ;;  %v172_v47 = vadd.f32 %v171_v59, %v170_v28  ;;  %v124_v6 = vrot.slane %v123_v41, 1  ;;  %v131_v0 = vrot.slane %v130_v63, 1 }
  0x1f   :  { %v138_v2 = vrot.slane %v137_v40, 1  ;;  %v145_v1 = vrot.slane %v144_v34, 1  ;;  %v152_v3 = vrot.slane %v151_v45, 1  ;;  %v159_v7 = vrot.slane %v158_v57, 1 }
  0x20   :  { %v166_v8 = vrot.slane %v165_v46, 1  ;;  %v173_v9 = vrot.slane %v172_v47, 1  ;;  %v690_v13 = vadd.f32 %v124_v6, %v123_v41  ;;  %v692_v14 = vadd.f32 %v131_v0, %v130_v63 }
  0x21   :  { %v694_v4 = vadd.f32 %v138_v2, %v137_v40  ;;  %v696_v53 = vadd.f32 %v145_v1, %v144_v34  ;;  %v698_v15 = vadd.f32 %v152_v3, %v151_v45  ;;  %v700_v35 = vadd.f32 %v159_v7, %v158_v57 }
  0x22   :  { %v702_v44 = vadd.f32 %v166_v8, %v165_v46  ;;  %v704_v59 = vadd.f32 %v173_v9, %v172_v47  ;;  %v175_v41 = vadd.f32 %v75_v38, %v71_v32  ;;  %v182_v40 = vadd.f32 %v76_v39, %v72_v33 }
  0x23   :  { %v891_v34 = vunpack.c.l.bf16 %v556_v17  ;;  %v892_v63 = vunpack.c.l.bf16 %v560_v19  ;;  %v893_v16 = vunpack.c.h.bf16 %v556_v17  ;;  %v894_v20 = vunpack.c.h.bf16 %v560_v19 }
  0x24   :  { %v895_v26 = vunpack.c.l.bf16 %v566_v24  ;;  %v896_v27 = vunpack.c.l.bf16 %v574_v30  ;;  %v210_v33 = vadd.f32 %v898_v18, %v897_v12  ;;  %v899_v38 = vunpack.c.l.bf16 %v568_v25 }
  0x25   :  { %v189_v10 = vadd.f32 %v892_v63, %v891_v34  ;;  %v196_v21 = vadd.f32 %v894_v20, %v893_v16  ;;  %v900_v39 = vunpack.c.l.bf16 %v576_v31  ;;  %v901_v17 = vunpack.c.h.bf16 %v568_v25 }
  0x26   :  { %v203_v32 = vadd.f32 %v896_v27, %v895_v26  ;;  %v902_v19 = vunpack.c.h.bf16 %v576_v31  ;;  %v176_v5 = vrot.slane %v175_v41, 4  ;;  %v183_v11 = vrot.slane %v182_v40, 4 }
  0x27   :  { %v217_v22 = vadd.f32 %v900_v39, %v899_v38  ;;  %v190_v23 = vrot.slane %v189_v10, 4  ;;  %v197_v29 = vrot.slane %v196_v21, 4  ;;  %v211_v57 = vrot.slane %v210_v33, 4 }
  0x28   :  { %v224_v28 = vadd.f32 %v902_v19, %v901_v17  ;;  %v204_v45 = vrot.slane %v203_v32, 4  ;;  %v177_v30 = vadd.f32 %v176_v5, %v175_v41  ;;  %v184_v47 = vadd.f32 %v183_v11, %v182_v40 }
  0x29   :  { %v218_v24 = vrot.slane %v217_v22, 4  ;;  %v191_v6 = vadd.f32 %v190_v23, %v189_v10  ;;  %v198_v0 = vadd.f32 %v197_v29, %v196_v21  ;;  %v212_v1 = vadd.f32 %v211_v57, %v210_v33 }
  0x2a   :  { %v225_v46 = vrot.slane %v224_v28, 4  ;;  %v205_v2 = vadd.f32 %v204_v45, %v203_v32  ;;  %v178_v25 = vrot.slane %v177_v30, 2  ;;  %v185_v8 = vrot.slane %v184_v47, 2 }
  0x2b   :  { %v219_v3 = vadd.f32 %v218_v24, %v217_v22  ;;  %v192_v31 = vrot.slane %v191_v6, 2  ;;  %v199_v9 = vrot.slane %v198_v0, 2  ;;  %v213_v63 = vrot.slane %v212_v1, 2 }
  0x2c   :  { %v226_v7 = vadd.f32 %v225_v46, %v224_v28  ;;  %v206_v34 = vrot.slane %v205_v2, 2  ;;  %v179_v26 = vadd.f32 %v178_v25, %v177_v30  ;;  %v186_v27 = vadd.f32 %v185_v8, %v184_v47 }
  0x2d   :  { %v220_v16 = vrot.slane %v219_v3, 2  ;;  %v193_v12 = vadd.f32 %v192_v31, %v191_v6  ;;  %v200_v18 = vadd.f32 %v199_v9, %v198_v0  ;;  %v214_v40 = vadd.f32 %v213_v63, %v212_v1 }
  0x2e   :  { %v227_v20 = vrot.slane %v226_v7, 2  ;;  %v207_v41 = vadd.f32 %v206_v34, %v205_v2  ;;  %v180_v32 = vrot.slane %v179_v26, 1  ;;  %v187_v33 = vrot.slane %v186_v27, 1 }
  0x2f   :  { %v221_v10 = vadd.f32 %v220_v16, %v219_v3  ;;  %v194_v38 = vrot.slane %v193_v12, 1  ;;  %v201_v39 = vrot.slane %v200_v18, 1  ;;  %v215_v17 = vrot.slane %v214_v40, 1 }
  0x30   :  { %v228_v21 = vadd.f32 %v227_v20, %v226_v7  ;;  %v208_v22 = vrot.slane %v207_v41, 1  ;;  %v738_v5 = vadd.f32 %v180_v32, %v179_v26  ;;  %v740_v11 = vadd.f32 %v187_v33, %v186_v27 }
  0x31   :  { %v222_v19 = vrot.slane %v221_v10, 1  ;;  %v742_v23 = vadd.f32 %v194_v38, %v193_v12  ;;  %v744_v29 = vadd.f32 %v201_v39, %v200_v18  ;;  %v748_v57 = vadd.f32 %v215_v17, %v214_v40 }
  0x32   :  { %v229_v28 = vrot.slane %v228_v21, 1  ;;  %v746_v45 = vadd.f32 %v208_v22, %v207_v41  ;;  %v903_v30 = vunpack.c.l.bf16 %v582_v36  ;;  %v904_v47 = vunpack.c.l.bf16 %v590_v42 }
  0x33   :  { %v750_v24 = vadd.f32 %v222_v19, %v221_v10  ;;  %v905_v0 = vunpack.c.h.bf16 %v582_v36  ;;  %v906_v2 = vunpack.c.h.bf16 %v590_v42  ;;  %v907_v3 = vunpack.c.l.bf16 %v584_v37 }
  0x34   :  { %v752_v46 = vadd.f32 %v229_v28, %v228_v21  ;;  %v231_v6 = vadd.f32 %v904_v47, %v903_v30  ;;  %v908_v7 = vunpack.c.l.bf16 %v592_v43  ;;  %v909_v8 = vunpack.c.h.bf16 %v584_v37 }
  0x35   :  { %v238_v1 = vadd.f32 %v906_v2, %v905_v0  ;;  %v910_v31 = vunpack.c.h.bf16 %v592_v43  ;;  %v911_v34 = vunpack.c.l.bf16 %v598_v48  ;;  %v912_v63 = vunpack.c.l.bf16 %v606_v54 }
  0x36   :  { %v245_v25 = vadd.f32 %v908_v7, %v907_v3  ;;  %v913_v36 = vunpack.c.h.bf16 %v598_v48  ;;  %v914_v42 = vunpack.c.h.bf16 %v606_v54  ;;  %v915_v26 = vunpack.c.l.bf16 %v600_v49 }
  0x37   :  { %v252_v9 = vadd.f32 %v910_v31, %v909_v8  ;;  %v259_v16 = vadd.f32 %v912_v63, %v911_v34  ;;  %v916_v27 = vunpack.c.l.bf16 %v608_v55  ;;  %v917_v37 = vunpack.c.h.bf16 %v600_v49 }
  0x38   :  { %v266_v20 = vadd.f32 %v914_v42, %v913_v36  ;;  %v918_v43 = vunpack.c.h.bf16 %v608_v55  ;;  %v232_v41 = vrot.slane %v231_v6, 4  ;;  %v239_v40 = vrot.slane %v238_v1, 4 }
  0x39   :  { %v273_v12 = vadd.f32 %v916_v27, %v915_v26  ;;  %v246_v10 = vrot.slane %v245_v25, 4  ;;  %v253_v21 = vrot.slane %v252_v9, 4  ;;  %v260_v32 = vrot.slane %v259_v16, 4 }
  0x3a   :  { %v280_v18 = vadd.f32 %v918_v43, %v917_v37  ;;  %v267_v33 = vrot.slane %v266_v20, 4  ;;  %v233_v54 = vadd.f32 %v232_v41, %v231_v6  ;;  %v240_v39 = vadd.f32 %v239_v40, %v238_v1 }
  0x3b   :  { %v274_v48 = vrot.slane %v273_v12, 4  ;;  %v247_v22 = vadd.f32 %v246_v10, %v245_v25  ;;  %v254_v17 = vadd.f32 %v253_v21, %v252_v9  ;;  %v261_v19 = vadd.f32 %v260_v32, %v259_v16 }
  0x3c   :  { %v281_v38 = vrot.slane %v280_v18, 4  ;;  %v268_v28 = vadd.f32 %v267_v33, %v266_v20  ;;  %v234_v49 = vrot.slane %v233_v54, 2  ;;  %v241_v0 = vrot.slane %v240_v39, 2 }
  0x3d   :  { %v275_v30 = vadd.f32 %v274_v48, %v273_v12  ;;  %v248_v55 = vrot.slane %v247_v22, 2  ;;  %v255_v2 = vrot.slane %v254_v17, 2  ;;  %v262_v3 = vrot.slane %v261_v19, 2 }
  0x3e   :  { %v282_v47 = vadd.f32 %v281_v38, %v280_v18  ;;  %v269_v7 = vrot.slane %v268_v28, 2  ;;  %v235_v34 = vadd.f32 %v234_v49, %v233_v54  ;;  %v242_v63 = vadd.f32 %v241_v0, %v240_v39 }
  0x3f   :  { %v276_v8 = vrot.slane %v275_v30, 2  ;;  %v249_v36 = vadd.f32 %v248_v55, %v247_v22  ;;  %v256_v42 = vadd.f32 %v255_v2, %v254_v17  ;;  %v263_v6 = vadd.f32 %v262_v3, %v261_v19 }
  0x40   :  { %v283_v31 = vrot.slane %v282_v47, 2  ;;  %v270_v1 = vadd.f32 %v269_v7, %v268_v28  ;;  %v236_v16 = vrot.slane %v235_v34, 1  ;;  %v243_v20 = vrot.slane %v242_v63, 1 }
  0x41   :  { %v277_v25 = vadd.f32 %v276_v8, %v275_v30  ;;  %v250_v26 = vrot.slane %v249_v36, 1  ;;  %v257_v27 = vrot.slane %v256_v42, 1  ;;  %v264_v12 = vrot.slane %v263_v6, 1 }
  0x42   :  { %v284_v9 = vadd.f32 %v283_v31, %v282_v47  ;;  %v271_v37 = vrot.slane %v270_v1, 1  ;;  %v786_v41 = vadd.f32 %v236_v16, %v235_v34  ;;  %v788_v40 = vadd.f32 %v243_v20, %v242_v63 }
  0x43   :  { %v278_v43 = vrot.slane %v277_v25, 1  ;;  %v790_v10 = vadd.f32 %v250_v26, %v249_v36  ;;  %v792_v21 = vadd.f32 %v257_v27, %v256_v42  ;;  %v794_v32 = vadd.f32 %v264_v12, %v263_v6 }
  0x44   :  { %v285_v18 = vrot.slane %v284_v9, 1  ;;  %v796_v33 = vadd.f32 %v271_v37, %v270_v1  ;;  %v919_v54 = vunpack.c.l.bf16 %v614_v60  ;;  %v920_v39 = vunpack.c.l.bf16 %v622_v52 }
  0x45   :  { %v798_v48 = vadd.f32 %v278_v43, %v277_v25  ;;  %v921_v17 = vunpack.c.h.bf16 %v614_v60  ;;  %v922_v19 = vunpack.c.h.bf16 %v622_v52  ;;  %v923_v30 = vunpack.c.l.bf16 %v616_v61 }
  0x46   :  { %v800_v38 = vadd.f32 %v285_v18, %v284_v9  ;;  %v287_v22 = vadd.f32 %v920_v39, %v919_v54  ;;  %v924_v47 = vunpack.c.l.bf16 %v624_v56  ;;  %v925_v0 = vunpack.c.h.bf16 %v616_v61 }
  0x47   :  { %v294_v28 = vadd.f32 %v922_v19, %v921_v17  ;;  %v926_v55 = vunpack.c.h.bf16 %v624_v56  ;;  %v927_v3 = vunpack.c.l.bf16 %v630_v51  ;;  %v928_v7 = vunpack.c.l.bf16 %v638_v50 }
  0x48   :  { %v301_v49 = vadd.f32 %v924_v47, %v923_v30  ;;  %v929_v60 = vunpack.c.h.bf16 %v630_v51  ;;  %v930_v52 = vunpack.c.h.bf16 %v638_v50  ;;  %v931_v34 = vunpack.c.l.bf16 %v632_v62 }
  0x49   :  { %v308_v2 = vadd.f32 %v926_v55, %v925_v0  ;;  %v315_v8 = vadd.f32 %v928_v7, %v927_v3  ;;  %v932_v63 = vunpack.c.l.bf16 %v640_v58  ;;  %v933_v61 = vunpack.c.h.bf16 %v632_v62 }
  0x4a   :  { %v322_v31 = vadd.f32 %v930_v52, %v929_v60  ;;  %v934_v56 = vunpack.c.h.bf16 %v640_v58  ;;  %v288_v6 = vrot.slane %v287_v22, 4  ;;  %v295_v1 = vrot.slane %v294_v28, 4 }
  0x4b   :  { %v329_v36 = vadd.f32 %v932_v63, %v931_v34  ;;  %v302_v25 = vrot.slane %v301_v49, 4  ;;  %v309_v9 = vrot.slane %v308_v2, 4  ;;  %v316_v16 = vrot.slane %v315_v8, 4 }
  0x4c   :  { %v336_v42 = vadd.f32 %v934_v56, %v933_v61  ;;  %v323_v20 = vrot.slane %v322_v31, 4  ;;  %v289_v50 = vadd.f32 %v288_v6, %v287_v22  ;;  %v296_v27 = vadd.f32 %v295_v1, %v294_v28 }
  0x4d   :  { %v330_v51 = vrot.slane %v329_v36, 4  ;;  %v303_v12 = vadd.f32 %v302_v25, %v301_v49  ;;  %v310_v37 = vadd.f32 %v309_v9, %v308_v2  ;;  %v317_v43 = vadd.f32 %v316_v16, %v315_v8 }
  0x4e   :  { %v337_v26 = vrot.slane %v336_v42, 4  ;;  %v324_v18 = vadd.f32 %v323_v20, %v322_v31  ;;  %v290_v62 = vrot.slane %v289_v50, 2  ;;  %v297_v17 = vrot.slane %v296_v27, 2 }
  0x4f   :  { %v331_v54 = vadd.f32 %v330_v51, %v329_v36  ;;  %v304_v58 = vrot.slane %v303_v12, 2  ;;  %v311_v19 = vrot.slane %v310_v37, 2  ;;  %v318_v30 = vrot.slane %v317_v43, 2 }
  0x50   :  { %v338_v39 = vadd.f32 %v337_v26, %v336_v42  ;;  %v325_v47 = vrot.slane %v324_v18, 2  ;;  %v291_v3 = vadd.f32 %v290_v62, %v289_v50  ;;  %v298_v7 = vadd.f32 %v297_v17, %v296_v27 }
  0x51   :  { %v332_v0 = vrot.slane %v331_v54, 2  ;;  %v305_v60 = vadd.f32 %v304_v58, %v303_v12  ;;  %v312_v52 = vadd.f32 %v311_v19, %v310_v37  ;;  %v319_v22 = vadd.f32 %v318_v30, %v317_v43 }
  0x52   :  { %v339_v55 = vrot.slane %v338_v39, 2  ;;  %v326_v28 = vadd.f32 %v325_v47, %v324_v18  ;;  %v292_v8 = vrot.slane %v291_v3, 1  ;;  %v299_v31 = vrot.slane %v298_v7, 1 }
  0x53   :  { %v333_v49 = vadd.f32 %v332_v0, %v331_v54  ;;  %v306_v34 = vrot.slane %v305_v60, 1  ;;  %v313_v63 = vrot.slane %v312_v52, 1  ;;  %v320_v36 = vrot.slane %v319_v22, 1 }
  0x54   :  { %v340_v2 = vadd.f32 %v339_v55, %v338_v39  ;;  %v327_v61 = vrot.slane %v326_v28, 1  ;;  %v293_v6 = vadd.f32 %v292_v8, %v291_v3  ;;  %v300_v1 = vadd.f32 %v299_v31, %v298_v7 }
  0x55   :  { %v334_v56 = vrot.slane %v333_v49, 1  ;;  %v307_v25 = vadd.f32 %v306_v34, %v305_v60  ;;  %v314_v9 = vadd.f32 %v313_v63, %v312_v52  ;;  %v321_v16 = vadd.f32 %v320_v36, %v319_v22 }
  0x56   :  { %v341_v42 = vrot.slane %v340_v2, 1  ;;  %v328_v20 = vadd.f32 %v327_v61, %v326_v28  ;;  %vm411_vm2 = vcmask 1043459   ;;  %v343_v50 = vmul.f32 0.0625, %v690_v13 }
  0x57   :  { %v335_v51 = vadd.f32 %v334_v56, %v333_v49  ;;  %v344_v27 = vmul.f32 0.0625, %v692_v14  ;;  %v345_v12 = vmul.f32 0.0625, %v694_v4  ;;  %v346_v37 = vmul.f32 0.0625, %v696_v53 }
  0x58   :  { %v342_v26 = vadd.f32 %v341_v42, %v340_v2  ;;  %vm413_vm3 = vcmask 1044484   ;;  %v347_v43 = vmul.f32 0.0625, %v698_v15  ;;  %v348_v18 = vmul.f32 0.0625, %v700_v35 }
  0x59   :  { %v349_v54 = vmul.f32 0.0625, %v702_v44  ;;  %v350_v39 = vmul.f32 0.0625, %v704_v59  ;;  %vm415_vm4 = vcmask 1045509   ;;  %v351_v62 = vmul.f32 0.0625, %v738_v5 }
  0x5a   :  { %v352_v13 = vmul.f32 0.0625, %v740_v11  ;;  %v353_v14 = vmul.f32 0.0625, %v742_v23  ;;  %v354_v4 = vmul.f32 0.0625, %v744_v29  ;;  %vm417_vm5 = vcmask 1046534  }
  0x5b   :  { %v355_v53 = vmul.f32 0.0625, %v746_v45  ;;  %v356_v15 = vmul.f32 0.0625, %v748_v57  ;;  %v357_v35 = vmul.f32 0.0625, %v750_v24  ;;  %v358_v44 = vmul.f32 0.0625, %v752_v46 }
  0x5c   :  { %vm419_vm6 = vcmask 1047559   ;;  %v359_v59 = vmul.f32 0.0625, %v786_v41  ;;  %v360_v5 = vmul.f32 0.0625, %v788_v40  ;;  %v361_v11 = vmul.f32 0.0625, %v790_v10 }
  0x5d   :  { %v362_v23 = vmul.f32 0.0625, %v792_v21  ;;  %v363_v29 = vmul.f32 0.0625, %v794_v32  ;;  %v364_v17 = vmul.f32 0.0625, %v796_v33  ;;  %v365_v45 = vmul.f32 0.0625, %v798_v48 }
  0x5e   :  { %v366_v57 = vmul.f32 0.0625, %v800_v38  ;;  %v367_v24 = vmul.f32 0.0625, %v293_v6  ;;  %v368_v58 = vmul.f32 0.0625, %v300_v1  ;;  %v369_v46 = vmul.f32 0.0625, %v307_v25 }
  0x5f   :  { %v370_v19 = vmul.f32 0.0625, %v314_v9  ;;  %v371_v30 = vmul.f32 0.0625, %v321_v16  ;;  %v372_v41 = vmul.f32 0.0625, %v328_v20  ;;  %v373_v47 = vmul.f32 0.0625, %v335_v51 }
  0x60   :  { %v374_v40 = vmul.f32 0.0625, %v342_v26  ;;  %v408_v10 = vsel %vm407_vm0, %v347_v43, %v343_v50  ;;  %v421_v21 = vsel %vm407_vm0, %v348_v18, %v344_v27  ;;  %v428_v32 = vsel %vm407_vm0, %v349_v54, %v345_v12 }
  0x61   :  { %v435_v33 = vsel %vm407_vm0, %v350_v39, %v346_v37  ;;  %v410_v48 = vsel %vm409_vm1, %v351_v62, %v408_v10  ;;  %v422_v38 = vsel %vm409_vm1, %v352_v13, %v421_v21  ;;  %v429_v0 = vsel %vm409_vm1, %v353_v14, %v428_v32 }
  0x62   :  { %v436_v55 = vsel %vm409_vm1, %v354_v4, %v435_v33  ;;  %v412_v3 = vsel %vm411_vm2, %v355_v53, %v410_v48  ;;  %v423_v7 = vsel %vm411_vm2, %v356_v15, %v422_v38  ;;  %v430_v60 = vsel %vm411_vm2, %v357_v35, %v429_v0 }
  0x63   :  { %v437_v52 = vsel %vm411_vm2, %v358_v44, %v436_v55  ;;  %v414_v22 = vsel %vm413_vm3, %v359_v59, %v412_v3  ;;  %v424_v28 = vsel %vm413_vm3, %v360_v5, %v423_v7  ;;  %v431_v49 = vsel %vm413_vm3, %v361_v11, %v430_v60 }
  0x64   :  { %v438_v2 = vsel %vm413_vm3, %v362_v23, %v437_v52  ;;  %v416_v8 = vsel %vm415_vm4, %v363_v29, %v414_v22  ;;  %v425_v31 = vsel %vm415_vm4, %v364_v17, %v424_v28  ;;  %v432_v34 = vsel %vm415_vm4, %v365_v45, %v431_v49 }
  0x65   :  { %v439_v63 = vsel %vm415_vm4, %v366_v57, %v438_v2  ;;  %v418_v36 = vsel %vm417_vm5, %v367_v24, %v416_v8  ;;  %v426_v61 = vsel %vm417_vm5, %v368_v58, %v425_v31  ;;  %v433_v56 = vsel %vm417_vm5, %v369_v46, %v432_v34 }
  0x66   :  { %v440_v42 = vsel %vm417_vm5, %v370_v19, %v439_v63  ;;  %v420_v6 = vsel %vm419_vm6, %v371_v30, %v418_v36  ;;  %v427_v1 = vsel %vm419_vm6, %v372_v41, %v426_v61  ;;  %v434_v25 = vsel %vm419_vm6, %v373_v47, %v433_v56 }
  0x67   :  { %v441_v9 = vsel %vm419_vm6, %v374_v40, %v440_v42  ;;  %446 = vst [vmem:[#allocation5] sm:$0xff] %v420_v6  ;;  %447 = vst [vmem:[#allocation5 + $0x8] sm:$0xff] %v427_v1 }
  0x68   :  { %448 = vst [vmem:[#allocation5 + $0x10] sm:$0xff] %v434_v25  ;;  %449 = vst [vmem:[#allocation5 + $0x18] sm:$0xff] %v441_v9 }
  0x69   :  { %500 = shalt.err (!%p497_p9)
}
  0x6a   :  { %459 = dma.vmem_to_hbm [thread:$0]  %s457_s13, 512, %s890_s1, [#allocation4]  }
  0x6b   :  { %511 = dma.done.wait [#allocation4], 512  }
  0x6c   :  { %512 = vsyncadd [#allocation4], 4294966784 }
  0x6d   :  { %463 = vsyncpa [#allocation3], 1 }
  0x6e   :  { %464 = vsyncpa [#allocation4], 1 }

</bundles_post_ra>
